<compile_context>
chip_gen: v5e
topology: v5e:2x2
jax: 0.10.0
libtpu: 0.0.40
codegen_flags: <defaults>
</compile_context>

<pallas_src>
import jax
import jax.numpy as jnp
from jax.experimental import pallas as pl
from jax.experimental.pallas import tpu as pltpu


def pooler_kernel(x_ref, w_ref, b_ref, o_ref):
    """x_ref: (Bp, Hp) token hidden states (resident across the grid),
    w_ref: (Hp, TN) pre-transposed weight tile (so y = x @ w),
    b_ref: (1, TN) f32 bias tile, o_ref: (Bp, TN) output tile."""
    # Native-dtype operands into the MXU; f32 accumulation.
    y = jnp.dot(x_ref[...], w_ref[...], preferred_element_type=jnp.float32)
    y = y + b_ref[...]                       # f32 bias add (VPU)
    o_ref[...] = jnp.tanh(y).astype(o_ref.dtype)   # f32 tanh (EUP), cast at store


def _pick_tile_n(hp, itemsize, max_tn=512, budget_bytes=8 * 1024 * 1024):
    """Largest multiple of 128 that divides hp, <= max_tn, and keeps the
    double-buffered weight tile under `budget_bytes` (safe for the scoped-VMEM
    defaults on v5e/v6e/v7x)."""
    tn = 128
    cand = 128
    while cand <= min(max_tn, hp):
        if hp % cand == 0 and 2 * hp * cand * itemsize <= budget_bytes:
            tn = cand
        cand += 128
    return tn


def hidden_token_pooler(hidden_states, weight, bias, token_index=0):
    """hidden_states: (B, S, H); weight: (H, H) PyTorch-style (out, in); bias: (H,)."""
    B, S, H = hidden_states.shape

    # PyTorch-style index semantics for a static token_index (incl. negatives).
    if isinstance(token_index, int):
        if token_index < -S or token_index >= S:
            raise IndexError(
                f"token_index {token_index} out of range for seq length {S}")
        if token_index < 0:
            token_index += S
    # NOTE: a traced token_index is clamped by dynamic_slice (PyTorch would raise).

    # Glue: gather the token column and pre-transpose the weight for x @ w.
    tok = jax.lax.dynamic_slice_in_dim(hidden_states, token_index, 1, axis=1)
    tok = tok.reshape(B, H)
    w_t = weight.T                                  # (in, out)
    b_f32 = bias.astype(jnp.float32)                # epilogue stays in f32

    # Pad to a lane-dense / layout-aligned shape: sublanes to 8 (16 for packed
    # bf16), lanes to 128.  Padded rows/cols are zero and sliced off at the end.
    sub = 16 if hidden_states.dtype == jnp.bfloat16 else 8
    Bp = pl.cdiv(B, sub) * sub
    Hp = pl.cdiv(H, 128) * 128

    if Bp == B and Hp == H:
        tok_p = tok
    else:
        tok_p = jnp.zeros((Bp, Hp), tok.dtype).at[:B, :H].set(tok)
    if Hp == H:
        w_p = w_t
        b_p = b_f32.reshape(1, H)
    else:
        w_p = jnp.zeros((Hp, Hp), w_t.dtype).at[:H, :H].set(w_t)
        b_p = jnp.zeros((1, Hp), jnp.float32).at[0, :H].set(b_f32)

    # N-tile the weight so its DMA is pipelined and VMEM-bounded (v7x-safe).
    tn = _pick_tile_n(Hp, jnp.dtype(w_p.dtype).itemsize)
    grid = (Hp // tn,)

    out_p = pl.pallas_call(
        pooler_kernel,
        out_shape=jax.ShapeDtypeStruct((Bp, Hp), hidden_states.dtype),
        grid_spec=pltpu.PrefetchScalarGridSpec(
            num_scalar_prefetch=0,
            grid=grid,
            in_specs=[
                pl.BlockSpec((Bp, Hp), lambda j: (0, 0)),   # x resident across grid
                pl.BlockSpec((Hp, tn), lambda j: (0, j)),   # pipelined weight N-tiles
                pl.BlockSpec((1, tn), lambda j: (0, j)),    # bias N-tiles (f32)
            ],
            out_specs=pl.BlockSpec((Bp, tn), lambda j: (0, j)),
        ),
        compiler_params=pltpu.CompilerParams(
            dimension_semantics=("parallel",),              # split tiles across TCs (v7x)
        ),
    )(tok_p, w_p, b_p)

    return out_p[:B, :H]


if __name__ == "__main__":
    # Small shapes consistent with the module: batch=2, seq=8, hidden=32.
    B, S, H = 2, 8, 32
    key = jax.random.PRNGKey(0)
    k_x, k_w, k_b = jax.random.split(key, 3)

    hidden_states = jax.random.normal(k_x, (B, S, H), dtype=jnp.float32)
    # Deterministic synthetic "bert_model.pooler.dense" parameters.
    weight = jax.random.normal(k_w, (H, H), dtype=jnp.float32) * 0.02  # (out, in)
    bias = jax.random.normal(k_b, (H,), dtype=jnp.float32) * 0.02

    token_index = 0

    # f32 path.
    out = hidden_token_pooler(hidden_states, weight, bias, token_index)
    out = jax.block_until_ready(out)
    ref = jnp.tanh(hidden_states[:, token_index, :] @ weight.T + bias)
    assert out.shape == (B, H)
    assert jnp.allclose(out, ref, atol=1e-5, rtol=1e-5)

    # bf16 path: operands go into the MXU at native bf16 (no in-kernel upcast);
    # bias-add/tanh stay f32, output stored as bf16.
    hs_bf = hidden_states.astype(jnp.bfloat16)
    w_bf = weight.astype(jnp.bfloat16)
    out_bf = jax.block_until_ready(
        hidden_token_pooler(hs_bf, w_bf, bias, token_index))
    ref_bf = jnp.tanh(
        hs_bf[:, token_index, :].astype(jnp.float32)
        @ w_bf.T.astype(jnp.float32) + bias)
    assert out_bf.shape == (B, H) and out_bf.dtype == jnp.bfloat16
    assert jnp.allclose(out_bf.astype(jnp.float32), ref_bf, atol=3e-2, rtol=3e-2)

    print("KERNEL_OK")
</pallas_src>

<mosaic_0001>
module attributes {stable_mosaic.version = 11 : i64} {
  func.func @pooler_kernel(%arg0: i32, %arg1: memref<8x128xf32, #tpu.memory_space<vmem>>, %arg2: memref<128x128xf32, #tpu.memory_space<vmem>>, %arg3: memref<1x128xf32, #tpu.memory_space<vmem>>, %arg4: memref<8x128xf32, #tpu.memory_space<vmem>>) attributes {dimension_semantics = [#tpu.dimension_semantics<parallel>], iteration_bounds = array<i64: 1>, scalar_prefetch = 0 : i64, scratch_operands = 0 : i64, tpu.core_type = #tpu.core_type<tc>, window_params = [{pipeline_mode = #tpu.pipeline_mode<synchronous>, transform_indices = @transform_0, window_bounds = array<i64: 8, 128>}, {transform_indices = @transform_1, window_bounds = array<i64: 128, 128>}, {transform_indices = @transform_2, window_bounds = array<i64: 1, 128>}, {transform_indices = @transform_3, window_bounds = array<i64: 8, 128>}]} {
    %c0 = arith.constant 0 : index
    %c0_0 = arith.constant 0 : index
    %0 = vector.load %arg1[%c0, %c0_0] : memref<8x128xf32, #tpu.memory_space<vmem>>, vector<8x128xf32>
    %c0_1 = arith.constant 0 : index
    %c0_2 = arith.constant 0 : index
    %1 = vector.load %arg2[%c0_1, %c0_2] : memref<128x128xf32, #tpu.memory_space<vmem>>, vector<128x128xf32>
    %cst = arith.constant dense<0.000000e+00> : vector<8x128xf32>
    %2 = tpu.matmul %0, %1, %cst {dimension_numbers = #tpu.dot_dimension_numbers<[1], [0], [0], [1], [0, 0, 1, 1], [], []>} : vector<8x128xf32>, vector<128x128xf32>, vector<8x128xf32> -> vector<8x128xf32>
    %c0_3 = arith.constant 0 : index
    %c0_4 = arith.constant 0 : index
    %3 = vector.load %arg3[%c0_3, %c0_4] : memref<1x128xf32, #tpu.memory_space<vmem>>, vector<1x128xf32>
    %4 = vector.broadcast %3 : vector<1x128xf32> to vector<8x128xf32>
    %5 = arith.addf %2, %4 : vector<8x128xf32>
    %6 = math.tanh %5 : vector<8x128xf32>
    %c0_5 = arith.constant 0 : index
    %c0_6 = arith.constant 0 : index
    %7 = vector.load %arg4[%c0_5, %c0_6] : memref<8x128xf32, #tpu.memory_space<vmem>>, vector<8x128xf32>
    tpu.vector_store %arg4[%c0_5, %c0_6], %6 {strides = array<i32>} : memref<8x128xf32, #tpu.memory_space<vmem>>, vector<8x128xf32>,
    return
  }
  func.func @transform_0(%arg0: i32) -> (i32, i32) {
    %c0_i32 = arith.constant 0 : i32
    %c0_i32_0 = arith.constant 0 : i32
    %c0_i32_1 = arith.constant 0 : i32
    return %c0_i32, %c0_i32_0 : i32, i32
  }
  func.func @transform_1(%arg0: i32) -> (i32, i32) {
    %c0_i32 = arith.constant 0 : i32
    %c0_i32_0 = arith.constant 0 : i32
    return %c0_i32, %arg0 : i32, i32
  }
  func.func @transform_2(%arg0: i32) -> (i32, i32) {
    %c0_i32 = arith.constant 0 : i32
    %c0_i32_0 = arith.constant 0 : i32
    return %c0_i32, %arg0 : i32, i32
  }
  func.func @transform_3(%arg0: i32) -> (i32, i32) {
    %c0_i32 = arith.constant 0 : i32
    %c0_i32_0 = arith.constant 0 : i32
    return %c0_i32, %arg0 : i32, i32
  }
}

</mosaic_0001>

<bundles_post_ra>
// kernel: tpu_custom_call.1
= control target key start
LH: loop header
LB: loop body
LE: loop exit
PB: predicated region body
PF: predicated region fallthrough
CT: control target
= control target key end

     0   :  { %8 = vsyncpa [#allocation3], 0  ;;  %s229_s0 = inlined_call_operand.hbm [shape: f32[8,128], index: 0, kind: input, shape index: {}]   ;;  %s230_s1 = inlined_call_operand.hbm [shape: f32[128,128], index: 1, kind: input, shape index: {}]   ;;  %s231_s2 = inlined_call_operand.vmem [shape: f32[1,128], index: 2, kind: input, shape index: {}]   ;;  %s232_s3 = inlined_call_operand.hbm [shape: f32[8,128], index: 3, kind: output, shape index: {}]  }
   0x1   :  { %9 = vsyncpa [#allocation6], 0 }
   0x2   :  { %10 = vsyncpa [#allocation4], 0  ;;  %s16_s14 = sshll.u32 %s229_s0, 4  ;;  %s192_s15 = smov [#allocation2]   ;;  %s17_s14 = int_to_ptr.hbm [resolvable:$true] %s16_s14 }
   0x3   :  { %s18_s16 = sshll.u32 %s192_s15, 4  ;;  %s26_s19 = sshll.u32 %s230_s1, 4  ;;  %s19_s16 = int_to_ptr.vmem [resolvable:$true] %s18_s16  ;;  %s27_s19 = int_to_ptr.hbm [resolvable:$true] %s26_s19 }
   0x4   :  { %21 = dma.hbm_to_vmem [thread:$0]  %s17_s14, 128, %s19_s16, [#allocation3]  }
   0x5   :  { %s193_s20 = smov [#allocation5]   ;;  %s194_s22 = smov 128  }
   0x6   :  { %s28_s21 = sshll.u32 %s193_s20, 4  ;;  %s195_s23 = smov 8   ;;  %s29_s21 = int_to_ptr.vmem [resolvable:$true] %s28_s21 }
   0x7   :  { %34 = dma.hbm_to_vmem [thread:$0]  %s27_s19, 2048, %s29_s21, [#allocation6], %s194_s22, %s194_s22, %s195_s23  }
   0x8   :  { %186 = dma.done.wait [#allocation3], 128  }
   0x9   :  { %187 = vsyncadd [#allocation3], 4294967168 }
   0xa   :  { %188 = dma.done.wait [#allocation6], 2048  }
   0xb   :  { %189 = vsyncadd [#allocation6], 4294965248  ;;  %v61_v0 = vld [vmem:[#allocation5 + $0x78] sm:$0xff]  ;;  %v60_v1 = vld [vmem:[#allocation5 + $0x70] sm:$0xff]  ;;  %s196_s24 = smov [#allocation7]   ;;  %s95_s28 = sshll.u32 %s232_s3, 4  ;;  %s96_s28 = int_to_ptr.hbm [resolvable:$true] %s95_s28 }
   0xc   :  { %66 = vmatpush.msra.mxu0 %v61_v0  ;;  %v59_v2 = vld [vmem:[#allocation5 + $0x68] sm:$0xff]  ;;  %v58_v3 = vld [vmem:[#allocation5 + $0x60] sm:$0xff]  ;;  %v57_v4 = vld [vmem:[#allocation5 + $0x58] sm:$0xff]  ;;  %s93_s25 = sshll.u32 %s196_s24, 4  ;;  %s94_s25 = int_to_ptr.vmem [resolvable:$true] %s93_s25 }
   0xd   :  { %v56_v5 = vld [vmem:[#allocation5 + $0x50] sm:$0xff]  ;;  %v55_v6 = vld [vmem:[#allocation5 + $0x48] sm:$0xff]  ;;  %v54_v7 = vld [vmem:[#allocation5 + $0x40] sm:$0xff] }
   0xe   :  { %67 = vmatpush.msra.mxu0 %v60_v1  ;;  %v53_v8 = vld [vmem:[#allocation5 + $0x38] sm:$0xff]  ;;  %v52_v9 = vld [vmem:[#allocation5 + $0x30] sm:$0xff]  ;;  %v51_v10 = vld [vmem:[#allocation5 + $0x28] sm:$0xff] }
   0xf   :  { %v50_v11 = vld [vmem:[#allocation5 + $0x20] sm:$0xff]  ;;  %v49_v12 = vld [vmem:[#allocation5 + $0x18] sm:$0xff]  ;;  %v48_v13 = vld [vmem:[#allocation5 + $0x10] sm:$0xff] }
  0x10   :  { %68 = vmatpush.msra.mxu0 %v59_v2  ;;  %v47_v14 = vld [vmem:[#allocation5 + $0x8] sm:$0xff]  ;;  %v46_v15 = vld [vmem:[#allocation5] sm:$0xff]  ;;  %v45_v16 = vld [vmem:[#allocation2] sm:$0xff] }
  0x11   :  { %v111_v17 = vld [vmem:[%s231_s2] ss:$0 sm:$0xff] }
  0x12   :  { %69 = vmatpush.msra.mxu0 %v58_v3 }
  0x14   :  { %70 = vmatpush.msra.mxu0 %v57_v4 }
  0x16   :  { %71 = vmatpush.msra.mxu0 %v56_v5 }
  0x18   :  { %72 = vmatpush.msra.mxu0 %v55_v6 }
  0x1a   :  { %73 = vmatpush.msra.mxu0 %v54_v7 }
  0x1c   :  { %74 = vmatpush.msra.mxu0 %v53_v8 }
  0x1e   :  { %75 = vmatpush.msra.mxu0 %v52_v9 }
  0x20   :  { %76 = vmatpush.msra.mxu0 %v51_v10 }
  0x22   :  { %77 = vmatpush.msra.mxu0 %v50_v11 }
  0x24   :  { %78 = vmatpush.msra.mxu0 %v49_v12 }
  0x26   :  { %79 = vmatpush.msra.mxu0 %v48_v13 }
  0x28   :  { %80 = vmatpush.msra.mxu0 %v47_v14 }
  0x2a   :  { %81 = vmatpush.msra.mxu0 %v46_v15 }
  0x2b   :  { %82 = vmatmul.f32.vlgmr.msra.gmra.mxu0 %v45_v16 }
  0xa8   :  { %v83_v18 = vpop.f32.mrf.mxu0 }
  0xa9   :  { %v84_v19 = vadd.f32 %v111_v17, %v83_v18 }
  0xab   :  { %112 = vtanh.f32 %v84_v19 }
  0xb1   :  { %v113_v20 = vpop.eup %112 }
  0xb2   :  { %87 = vst [vmem:[#allocation7] sm:$0xff] %v113_v20 }
  0xb3   :  { %98 = dma.vmem_to_hbm [thread:$0]  %s94_s25, 128, %s96_s28, [#allocation4]  }
  0xb4   :  { %190 = dma.done.wait [#allocation4], 128  }
  0xb5   :  { %191 = vsyncadd [#allocation4], 4294967168 }
  0xb6   :  { %103 = vsyncpa [#allocation3], 1 }
  0xb7   :  { %104 = vsyncpa [#allocation6], 1 }
  0xb8   :  { %105 = vsyncpa [#allocation4], 1 }

</bundles_post_ra>
